<compile_context>
chip_gen: v7x
topology: tpu7x:2x2x1
jax: 0.10.0
libtpu: 0.0.40
codegen_flags: <defaults>
</compile_context>

<pallas_src>
import functools

import jax
import jax.numpy as jnp
from jax.experimental import pallas as pl
from jax.experimental.pallas import tpu as pltpu

EPS = 1e-5

# Tile caps for the fused stage kernel.  K (Cin) is never tiled (full-Cin
# blocks), so the live footprint at real ResNet dims (tm=512, tn=512, Cin=2048,
# bf16) is ~10 MiB with double buffering — far below the 48 MiB limit below.
TM_CAP, TN_CAP = 512, 512
CLS_TN_CAP = 512
VMEM_LIMIT = 48 * 1024 * 1024   # < v7x's 64 MiB physical; raised vs. 32 MiB default


def _tile(dim, cap):
    """Largest block size <= cap that divides dim (real Backbone dims are
    powers of two); falls back to the full dim so boundary blocks never need
    masking."""
    if dim <= cap:
        return dim
    t = cap
    while t > 8 and dim % t != 0:
        t //= 2
    return t if dim % t == 0 else dim


def _cls_tile(n_pad, cap=CLS_TN_CAP):
    """Largest multiple of 128 <= cap that divides n_pad (n_pad % 128 == 0)."""
    t = max(128, min(cap, n_pad) - (min(cap, n_pad) % 128))
    while t > 128 and n_pad % t != 0:
        t -= 128
    return t


# ----------------------------------------------------------------------------
# Fused stage kernel: 1x1 conv (full-Cin matmul) + bias + ReLU + spatial sum
# ----------------------------------------------------------------------------
def _stage_kernel(x_ref, w_ref, b_ref, y_ref, pooled_ref):
    # grid = (Cout//tn, B, HW//tm); full Cin per block -> no K accumulation.
    mi = pl.program_id(2)

    # bf16 operands, f32 MXU accumulation.
    y = jnp.dot(x_ref[0], w_ref[...], preferred_element_type=jnp.float32)
    y = jnp.maximum(y + b_ref[...], 0.0)          # f32 epilogue (v5e-safe)
    y_ref[0] = y.astype(y_ref.dtype)              # bf16 store, lane-dense

    # Partial spatial sum (from the f32 pre-cast value) for the global pools.
    psum = jnp.sum(y, axis=0, keepdims=True)      # (1, tn) f32

    @pl.when(mi == 0)
    def _():
        pooled_ref[0] = psum

    @pl.when(mi > 0)
    def _():
        pooled_ref[0] += psum


def fused_stage(x, w, b):
    """x: (B, HW, Cin) bf16 channels-last.  Returns
       y:      (B, HW, Cout) bf16 = relu(x @ w + b)   (fed to the next stage)
       pooled: (B, Cout)     f32  = spatial mean of y (for the Backbone head)."""
    B, HW, Cin = x.shape
    Cout = w.shape[1]
    tm, tn = _tile(HW, TM_CAP), _tile(Cout, TN_CAP)
    # Cout-tile axis outermost: the (Cin, tn) weight block index is constant
    # across the inner (B, HW-tile) loops -> fetched once per Cout-tile.
    grid = (Cout // tn, B, HW // tm)

    y, pooled = pl.pallas_call(
        _stage_kernel,
        out_shape=(
            jax.ShapeDtypeStruct((B, HW, Cout), jnp.bfloat16),
            jax.ShapeDtypeStruct((B, 1, Cout), jnp.float32),
        ),
        grid_spec=pltpu.PrefetchScalarGridSpec(
            num_scalar_prefetch=0,
            grid=grid,
            in_specs=[
                pl.BlockSpec((1, tm, Cin), lambda nj, b_, mi: (b_, mi, 0)),
                pl.BlockSpec((Cin, tn), lambda nj, b_, mi: (0, nj)),
                pl.BlockSpec((1, tn), lambda nj, b_, mi: (0, nj)),
            ],
            out_specs=(
                pl.BlockSpec((1, tm, tn), lambda nj, b_, mi: (b_, mi, nj)),
                pl.BlockSpec((1, 1, tn), lambda nj, b_, mi: (b_, 0, nj)),
            ),
        ),
        compiler_params=pltpu.CompilerParams(
            # Cout-tile / batch axes shard across v7x's two TensorCores; the
            # HW-tile axis accumulates the pooled block -> arbitrary and
            # therefore never split across cores.
            dimension_semantics=("parallel", "parallel", "arbitrary"),
            vmem_limit_bytes=VMEM_LIMIT,
        ),
    )(x, w, b.reshape(1, Cout))

    return y, pooled[:, 0, :] * (1.0 / HW)


# ----------------------------------------------------------------------------
# BNNeck + classifier, tiled over the (padded) class dimension
# ----------------------------------------------------------------------------
def _bnneck_cls_kernel(f_ref, g_ref, be_ref, w_ref, feat_ref, cls_ref):
    # BatchNorm1d with batch statistics (training mode), affine, followed by
    # the bias-free classifier Linear, tiled over class blocks.
    # TODO(synk): eval-mode BNNeck uses running statistics (not provided here).
    f = f_ref[...]
    mean = jnp.mean(f, axis=0, keepdims=True)
    var = jnp.mean((f - mean) ** 2, axis=0, keepdims=True)
    feat = (f - mean) * jax.lax.rsqrt(var + EPS) * g_ref[...] + be_ref[...]

    @pl.when(pl.program_id(0) == 0)
    def _():
        feat_ref[...] = feat

    cls_ref[...] = jnp.dot(feat, w_ref[...], preferred_element_type=jnp.float32)


def bnneck_classifier(global_feat, gamma, beta, cls_w_t_padded, num_classes):
    B, C = global_feat.shape
    n_pad = cls_w_t_padded.shape[1]        # multiple of 128 -> lane-dense stores
    tn = _cls_tile(n_pad)
    feat, cls = pl.pallas_call(
        _bnneck_cls_kernel,
        out_shape=(
            jax.ShapeDtypeStruct((B, C), jnp.float32),
            jax.ShapeDtypeStruct((B, n_pad), jnp.float32),
        ),
        grid_spec=pltpu.PrefetchScalarGridSpec(
            num_scalar_prefetch=0,
            grid=(n_pad // tn,),
            in_specs=[
                pl.BlockSpec((B, C), lambda j: (0, 0)),
                pl.BlockSpec((1, C), lambda j: (0, 0)),
                pl.BlockSpec((1, C), lambda j: (0, 0)),
                pl.BlockSpec((C, tn), lambda j: (0, j)),
            ],
            out_specs=(
                pl.BlockSpec((B, C), lambda j: (0, 0)),
                pl.BlockSpec((B, tn), lambda j: (0, j)),
            ),
        ),
        compiler_params=pltpu.CompilerParams(
            # feat block is resident/revisited across the class axis.
            dimension_semantics=("arbitrary",),
            vmem_limit_bytes=VMEM_LIMIT,
        ),
    )(global_feat, gamma.reshape(1, C), beta.reshape(1, C), cls_w_t_padded)
    return feat, cls[:, :num_classes]


# ----------------------------------------------------------------------------
# Backbone forward (training-mode return tuple)
# ----------------------------------------------------------------------------
def backbone_forward(x_nchw, params, *, num_classes):
    B, _, H, W = x_nchw.shape
    strides = (2, 2, 2, 1)                 # last_stride = 1

    # Single layout conversion: channels-last (lanes) end-to-end, bf16 storage.
    cur = jnp.transpose(x_nchw, (0, 2, 3, 1)).astype(jnp.bfloat16)   # (B,H,W,C)
    h, w = H, W

    pooled_stages = []
    for s in range(4):
        if strides[s] == 2:
            # TODO(synk): fuse this 2x2 average pool into the stage kernel
            # (downsample-on-write / strided input blocks).  Left in the
            # wrapper because it needs stride-2 sublane access on packed bf16
            # blocks (or minor-dim reshapes), which could not be validated on
            # hardware here; bf16 storage already halves its HBM traffic.
            c = cur.shape[-1]
            cur = jnp.mean(cur.reshape(B, h // 2, 2, w // 2, 2, c),
                           axis=(2, 4), dtype=jnp.float32).astype(jnp.bfloat16)
            h, w = h // 2, w // 2
        y, pooled = fused_stage(cur.reshape(B, h * w, cur.shape[-1]),
                                params["w%d" % s], params["b%d" % s])
        pooled_stages.append(pooled)
        cur = y.reshape(B, h, w, y.shape[-1])

    # SNR-split pooled branches, resolved algebraically (exact for the
    # stand-in's affine=False InstanceNorm):
    #   avg_pool(IN(x))     == 0            (IN output has zero spatial mean)
    #   avg_pool(x - IN(x)) == avg_pool(x)
    # so the IN / residual feature maps never need to be materialized.
    x_1, x_2, x_3, x_4 = pooled_stages
    x_IN_1, x_IN_2, x_IN_3, x_IN_4 = (jnp.zeros_like(p) for p in pooled_stages)
    x_1u, x_2u, x_3u, x_4u = pooled_stages

    global_feat = x_4
    # neck == 'bnneck': feat = bottleneck(global_feat); cls = classifier(feat)
    _feat, cls_score = bnneck_classifier(
        global_feat, params["bn_gamma"], params["bn_beta"],
        params["cls_w_t"], num_classes)

    return (cls_score, global_feat, x_IN_4, x_4u, x_3, x_IN_3, x_3u,
            x_2, x_IN_2, x_2u, x_1, x_IN_1, x_1u)


# ----------------------------------------------------------------------------
# Deterministic parameter init (mirrors weights_init_kaiming / _classifier)
# ----------------------------------------------------------------------------
def init_params(key, c_in, stage_channels, num_classes):
    params = {}
    cin = c_in
    for s, cout in enumerate(stage_channels):
        key, k = jax.random.split(key)
        std = (2.0 / cin) ** 0.5  # kaiming_normal, fan_in = Cin * 1 * 1
        params["w%d" % s] = (std * jax.random.normal(k, (cin, cout), jnp.float32)
                             ).astype(jnp.bfloat16)
        params["b%d" % s] = jnp.zeros((cout,), jnp.float32)
        cin = cout
    in_planes = stage_channels[-1]
    params["bn_gamma"] = jnp.ones((in_planes,), jnp.float32)   # BN weight = 1
    params["bn_beta"] = jnp.zeros((in_planes,), jnp.float32)   # BN bias = 0 (frozen)
    key, k = jax.random.split(key)
    # classifier: Linear(in_planes, num_classes, bias=False), std=0.001;
    # stored transposed (f32) and zero-padded on lanes to a multiple of 128.
    w_cls = 0.001 * jax.random.normal(k, (in_planes, num_classes), jnp.float32)
    n_pad = ((num_classes + 127) // 128) * 128
    params["cls_w_t"] = jnp.pad(w_cls, ((0, 0), (0, n_pad - num_classes)))
    return params


if __name__ == "__main__":
    key = jax.random.PRNGKey(0)
    kx, kp = jax.random.split(key)

    B, C, H, W = 2, 4, 16, 16
    stage_channels = (8, 16, 32, 64)   # scaled-down stand-ins for 256/512/1024/2048
    num_classes = 10

    x = jax.random.normal(kx, (B, C, H, W), jnp.float32)
    params = init_params(kp, C, stage_channels, num_classes)

    fwd = jax.jit(functools.partial(backbone_forward, num_classes=num_classes))
    outs = jax.block_until_ready(fwd(x, params))

    # basic sanity checks on shapes
    cls_score, global_feat = outs[0], outs[1]
    assert cls_score.shape == (B, num_classes)
    assert global_feat.shape == (B, stage_channels[-1])
    assert len(outs) == 13

    print("KERNEL_OK")
</pallas_src>

<mosaic_0001>
module attributes {stable_mosaic.version = 11 : i64} {
  func.func @_stage_kernel(%arg0: i32, %arg1: i32, %arg2: i32, %arg3: memref<1x64x4xbf16, #tpu.memory_space<vmem>>, %arg4: memref<4x8xbf16, #tpu.memory_space<vmem>>, %arg5: memref<1x8xf32, #tpu.memory_space<vmem>>, %arg6: memref<1x64x8xbf16, #tpu.memory_space<vmem>>, %arg7: memref<1x1x8xf32, #tpu.memory_space<vmem>>) attributes {dimension_semantics = [#tpu.dimension_semantics<parallel>, #tpu.dimension_semantics<parallel>, #tpu.dimension_semantics<arbitrary>], iteration_bounds = array<i64: 1, 2, 1>, scalar_prefetch = 0 : i64, scratch_operands = 0 : i64, tpu.core_type = #tpu.core_type<tc>, window_params = [{transform_indices = @transform_0, window_bounds = array<i64: 1, 64, 4>}, {transform_indices = @transform_1, window_bounds = array<i64: 4, 8>}, {transform_indices = @transform_2, window_bounds = array<i64: 1, 8>}, {transform_indices = @transform_3, window_bounds = array<i64: 1, 64, 8>}, {transform_indices = @transform_4, window_bounds = array<i64: 1, 1, 8>}]} {
    %c0 = arith.constant 0 : index
    %c0_0 = arith.constant 0 : index
    %c0_1 = arith.constant 0 : index
    %0 = vector.load %arg3[%c0, %c0_0, %c0_1] : memref<1x64x4xbf16, #tpu.memory_space<vmem>>, vector<1x64x4xbf16>
    %1 = vector.shape_cast %0 : vector<1x64x4xbf16> to vector<64x4xbf16>
    %c0_2 = arith.constant 0 : index
    %c0_3 = arith.constant 0 : index
    %2 = vector.load %arg4[%c0_2, %c0_3] : memref<4x8xbf16, #tpu.memory_space<vmem>>, vector<4x8xbf16>
    %cst = arith.constant dense<0.000000e+00> : vector<64x8xf32>
    %3 = tpu.matmul %1, %2, %cst {dimension_numbers = #tpu.dot_dimension_numbers<[1], [0], [0], [1], [0, 0, 1, 1], [], []>} : vector<64x4xbf16>, vector<4x8xbf16>, vector<64x8xf32> -> vector<64x8xf32>
    %c0_4 = arith.constant 0 : index
    %c0_5 = arith.constant 0 : index
    %4 = vector.load %arg5[%c0_4, %c0_5] : memref<1x8xf32, #tpu.memory_space<vmem>>, vector<1x8xf32>
    %5 = vector.broadcast %4 : vector<1x8xf32> to vector<64x8xf32>
    %6 = arith.addf %3, %5 : vector<64x8xf32>
    %cst_6 = arith.constant 0.000000e+00 : f32
    %7 = vector.broadcast %cst_6 : f32 to vector<64x8xf32>
    %8 = arith.maximumf %6, %7 : vector<64x8xf32>
    %9 = arith.truncf %8 : vector<64x8xf32> to vector<64x8xbf16>
    %c0_7 = arith.constant 0 : index
    %c0_8 = arith.constant 0 : index
    %c0_9 = arith.constant 0 : index
    %10 = vector.load %arg6[%c0_7, %c0_8, %c0_9] : memref<1x64x8xbf16, #tpu.memory_space<vmem>>, vector<1x64x8xbf16>
    %11 = vector.shape_cast %10 : vector<1x64x8xbf16> to vector<64x8xbf16>
    %12 = vector.shape_cast %9 : vector<64x8xbf16> to vector<1x64x8xbf16>
    tpu.vector_store %arg6[%c0_7, %c0_8, %c0_9], %12 {strides = array<i32>} : memref<1x64x8xbf16, #tpu.memory_space<vmem>>, vector<1x64x8xbf16>,
    %cst_10 = arith.constant dense<0.000000e+00> : vector<8xf32>
    %13 = vector.multi_reduction <add>, %8, %cst_10 [0] : vector<64x8xf32> to vector<8xf32>
    %14 = vector.shape_cast %13 : vector<8xf32> to vector<1x8xf32>
    %c0_i32 = arith.constant 0 : i32
    %15 = arith.cmpi eq, %arg2, %c0_i32 : i32
    %16 = arith.extui %15 : i1 to i32
    %c0_i32_11 = arith.constant 0 : i32
    %17 = arith.cmpi ne, %16, %c0_i32_11 : i32
    scf.if %17 {
      %c0_14 = arith.constant 0 : index
      %c0_15 = arith.constant 0 : index
      %c0_16 = arith.constant 0 : index
      %21 = vector.load %arg7[%c0_14, %c0_15, %c0_16] : memref<1x1x8xf32, #tpu.memory_space<vmem>>, vector<1x1x8xf32>
      %22 = vector.shape_cast %21 : vector<1x1x8xf32> to vector<1x8xf32>
      %23 = vector.shape_cast %14 : vector<1x8xf32> to vector<1x1x8xf32>
      tpu.vector_store %arg7[%c0_14, %c0_15, %c0_16], %23 {strides = array<i32>} : memref<1x1x8xf32, #tpu.memory_space<vmem>>, vector<1x1x8xf32>,
    } else {
    }
    %c0_i32_12 = arith.constant 0 : i32
    %18 = arith.cmpi sgt, %arg2, %c0_i32_12 : i32
    %19 = arith.extui %18 : i1 to i32
    %c0_i32_13 = arith.constant 0 : i32
    %20 = arith.cmpi ne, %19, %c0_i32_13 : i32
    scf.if %20 {
      %c0_14 = arith.constant 0 : index
      %c0_15 = arith.constant 0 : index
      %c0_16 = arith.constant 0 : index
      %21 = vector.load %arg7[%c0_14, %c0_15, %c0_16] : memref<1x1x8xf32, #tpu.memory_space<vmem>>, vector<1x1x8xf32>
      %22 = vector.shape_cast %21 : vector<1x1x8xf32> to vector<1x8xf32>
      %23 = arith.addf %22, %14 : vector<1x8xf32>
      %c0_17 = arith.constant 0 : index
      %c0_18 = arith.constant 0 : index
      %c0_19 = arith.constant 0 : index
      %24 = vector.load %arg7[%c0_17, %c0_18, %c0_19] : memref<1x1x8xf32, #tpu.memory_space<vmem>>, vector<1x1x8xf32>
      %25 = vector.shape_cast %24 : vector<1x1x8xf32> to vector<1x8xf32>
      %26 = vector.shape_cast %23 : vector<1x8xf32> to vector<1x1x8xf32>
      tpu.vector_store %arg7[%c0_17, %c0_18, %c0_19], %26 {strides = array<i32>} : memref<1x1x8xf32, #tpu.memory_space<vmem>>, vector<1x1x8xf32>,
    } else {
    }
    return
  }
  func.func @transform_0(%arg0: i32, %arg1: i32, %arg2: i32) -> (i32, i32, i32) {
    %c0_i32 = arith.constant 0 : i32
    %c0_i32_0 = arith.constant 0 : i32
    return %arg1, %arg2, %c0_i32 : i32, i32, i32
  }
  func.func @transform_1(%arg0: i32, %arg1: i32, %arg2: i32) -> (i32, i32) {
    %c0_i32 = arith.constant 0 : i32
    %c0_i32_0 = arith.constant 0 : i32
    return %c0_i32, %arg0 : i32, i32
  }
  func.func @transform_2(%arg0: i32, %arg1: i32, %arg2: i32) -> (i32, i32) {
    %c0_i32 = arith.constant 0 : i32
    %c0_i32_0 = arith.constant 0 : i32
    return %c0_i32, %arg0 : i32, i32
  }
  func.func @transform_3(%arg0: i32, %arg1: i32, %arg2: i32) -> (i32, i32, i32) {
    %c0_i32 = arith.constant 0 : i32
    return %arg1, %arg2, %arg0 : i32, i32, i32
  }
  func.func @transform_4(%arg0: i32, %arg1: i32, %arg2: i32) -> (i32, i32, i32) {
    %c0_i32 = arith.constant 0 : i32
    %c0_i32_0 = arith.constant 0 : i32
    return %arg1, %c0_i32, %arg0 : i32, i32, i32
  }
}

module attributes {stable_mosaic.version = 11 : i64} {
  func.func @_stage_kernel(%arg0: i32, %arg1: i32, %arg2: i32, %arg3: memref<1x16x8xbf16, #tpu.memory_space<vmem>>, %arg4: memref<8x16xbf16, #tpu.memory_space<vmem>>, %arg5: memref<1x16xf32, #tpu.memory_space<vmem>>, %arg6: memref<1x16x16xbf16, #tpu.memory_space<vmem>>, %arg7: memref<1x1x16xf32, #tpu.memory_space<vmem>>) attributes {dimension_semantics = [#tpu.dimension_semantics<parallel>, #tpu.dimension_semantics<parallel>, #tpu.dimension_semantics<arbitrary>], iteration_bounds = array<i64: 1, 2, 1>, scalar_prefetch = 0 : i64, scratch_operands = 0 : i64, tpu.core_type = #tpu.core_type<tc>, window_params = [{transform_indices = @transform_0, window_bounds = array<i64: 1, 16, 8>}, {transform_indices = @transform_1, window_bounds = array<i64: 8, 16>}, {transform_indices = @transform_2, window_bounds = array<i64: 1, 16>}, {transform_indices = @transform_3, window_bounds = array<i64: 1, 16, 16>}, {transform_indices = @transform_4, window_bounds = array<i64: 1, 1, 16>}]} {
    %c0 = arith.constant 0 : index
    %c0_0 = arith.constant 0 : index
    %c0_1 = arith.constant 0 : index
    %0 = vector.load %arg3[%c0, %c0_0, %c0_1] : memref<1x16x8xbf16, #tpu.memory_space<vmem>>, vector<1x16x8xbf16>
    %1 = vector.shape_cast %0 : vector<1x16x8xbf16> to vector<16x8xbf16>
    %c0_2 = arith.constant 0 : index
    %c0_3 = arith.constant 0 : index
    %2 = vector.load %arg4[%c0_2, %c0_3] : memref<8x16xbf16, #tpu.memory_space<vmem>>, vector<8x16xbf16>
    %cst = arith.constant dense<0.000000e+00> : vector<16x16xf32>
    %3 = tpu.matmul %1, %2, %cst {dimension_numbers = #tpu.dot_dimension_numbers<[1], [0], [0], [1], [0, 0, 1, 1], [], []>} : vector<16x8xbf16>, vector<8x16xbf16>, vector<16x16xf32> -> vector<16x16xf32>
    %c0_4 = arith.constant 0 : index
    %c0_5 = arith.constant 0 : index
    %4 = vector.load %arg5[%c0_4, %c0_5] : memref<1x16xf32, #tpu.memory_space<vmem>>, vector<1x16xf32>
    %5 = vector.broadcast %4 : vector<1x16xf32> to vector<16x16xf32>
    %6 = arith.addf %3, %5 : vector<16x16xf32>
    %cst_6 = arith.constant 0.000000e+00 : f32
    %7 = vector.broadcast %cst_6 : f32 to vector<16x16xf32>
    %8 = arith.maximumf %6, %7 : vector<16x16xf32>
    %9 = arith.truncf %8 : vector<16x16xf32> to vector<16x16xbf16>
    %c0_7 = arith.constant 0 : index
    %c0_8 = arith.constant 0 : index
    %c0_9 = arith.constant 0 : index
    %10 = vector.load %arg6[%c0_7, %c0_8, %c0_9] : memref<1x16x16xbf16, #tpu.memory_space<vmem>>, vector<1x16x16xbf16>
    %11 = vector.shape_cast %10 : vector<1x16x16xbf16> to vector<16x16xbf16>
    %12 = vector.shape_cast %9 : vector<16x16xbf16> to vector<1x16x16xbf16>
    tpu.vector_store %arg6[%c0_7, %c0_8, %c0_9], %12 {strides = array<i32>} : memref<1x16x16xbf16, #tpu.memory_space<vmem>>, vector<1x16x16xbf16>,
    %cst_10 = arith.constant dense<0.000000e+00> : vector<16xf32>
    %13 = vector.multi_reduction <add>, %8, %cst_10 [0] : vector<16x16xf32> to vector<16xf32>
    %14 = vector.shape_cast %13 : vector<16xf32> to vector<1x16xf32>
    %c0_i32 = arith.constant 0 : i32
    %15 = arith.cmpi eq, %arg2, %c0_i32 : i32
    %16 = arith.extui %15 : i1 to i32
    %c0_i32_11 = arith.constant 0 : i32
    %17 = arith.cmpi ne, %16, %c0_i32_11 : i32
    scf.if %17 {
      %c0_14 = arith.constant 0 : index
      %c0_15 = arith.constant 0 : index
      %c0_16 = arith.constant 0 : index
      %21 = vector.load %arg7[%c0_14, %c0_15, %c0_16] : memref<1x1x16xf32, #tpu.memory_space<vmem>>, vector<1x1x16xf32>
      %22 = vector.shape_cast %21 : vector<1x1x16xf32> to vector<1x16xf32>
      %23 = vector.shape_cast %14 : vector<1x16xf32> to vector<1x1x16xf32>
      tpu.vector_store %arg7[%c0_14, %c0_15, %c0_16], %23 {strides = array<i32>} : memref<1x1x16xf32, #tpu.memory_space<vmem>>, vector<1x1x16xf32>,
    } else {
    }
    %c0_i32_12 = arith.constant 0 : i32
    %18 = arith.cmpi sgt, %arg2, %c0_i32_12 : i32
    %19 = arith.extui %18 : i1 to i32
    %c0_i32_13 = arith.constant 0 : i32
    %20 = arith.cmpi ne, %19, %c0_i32_13 : i32
    scf.if %20 {
      %c0_14 = arith.constant 0 : index
      %c0_15 = arith.constant 0 : index
      %c0_16 = arith.constant 0 : index
      %21 = vector.load %arg7[%c0_14, %c0_15, %c0_16] : memref<1x1x16xf32, #tpu.memory_space<vmem>>, vector<1x1x16xf32>
      %22 = vector.shape_cast %21 : vector<1x1x16xf32> to vector<1x16xf32>
      %23 = arith.addf %22, %14 : vector<1x16xf32>
      %c0_17 = arith.constant 0 : index
      %c0_18 = arith.constant 0 : index
      %c0_19 = arith.constant 0 : index
      %24 = vector.load %arg7[%c0_17, %c0_18, %c0_19] : memref<1x1x16xf32, #tpu.memory_space<vmem>>, vector<1x1x16xf32>
      %25 = vector.shape_cast %24 : vector<1x1x16xf32> to vector<1x16xf32>
      %26 = vector.shape_cast %23 : vector<1x16xf32> to vector<1x1x16xf32>
      tpu.vector_store %arg7[%c0_17, %c0_18, %c0_19], %26 {strides = array<i32>} : memref<1x1x16xf32, #tpu.memory_space<vmem>>, vector<1x1x16xf32>,
    } else {
    }
    return
  }
  func.func @transform_0(%arg0: i32, %arg1: i32, %arg2: i32) -> (i32, i32, i32) {
    %c0_i32 = arith.constant 0 : i32
    %c0_i32_0 = arith.constant 0 : i32
    return %arg1, %arg2, %c0_i32 : i32, i32, i32
  }
  func.func @transform_1(%arg0: i32, %arg1: i32, %arg2: i32) -> (i32, i32) {
    %c0_i32 = arith.constant 0 : i32
    %c0_i32_0 = arith.constant 0 : i32
    return %c0_i32, %arg0 : i32, i32
  }
  func.func @transform_2(%arg0: i32, %arg1: i32, %arg2: i32) -> (i32, i32) {
    %c0_i32 = arith.constant 0 : i32
    %c0_i32_0 = arith.constant 0 : i32
    return %c0_i32, %arg0 : i32, i32
  }
  func.func @transform_3(%arg0: i32, %arg1: i32, %arg2: i32) -> (i32, i32, i32) {
    %c0_i32 = arith.constant 0 : i32
    return %arg1, %arg2, %arg0 : i32, i32, i32
  }
  func.func @transform_4(%arg0: i32, %arg1: i32, %arg2: i32) -> (i32, i32, i32) {
    %c0_i32 = arith.constant 0 : i32
    %c0_i32_0 = arith.constant 0 : i32
    return %arg1, %c0_i32, %arg0 : i32, i32, i32
  }
}

module attributes {stable_mosaic.version = 11 : i64} {
  func.func @_stage_kernel(%arg0: i32, %arg1: i32, %arg2: i32, %arg3: memref<1x4x16xbf16, #tpu.memory_space<vmem>>, %arg4: memref<16x32xbf16, #tpu.memory_space<vmem>>, %arg5: memref<1x32xf32, #tpu.memory_space<vmem>>, %arg6: memref<1x4x32xbf16, #tpu.memory_space<vmem>>, %arg7: memref<1x1x32xf32, #tpu.memory_space<vmem>>) attributes {dimension_semantics = [#tpu.dimension_semantics<parallel>, #tpu.dimension_semantics<parallel>, #tpu.dimension_semantics<arbitrary>], iteration_bounds = array<i64: 1, 2, 1>, scalar_prefetch = 0 : i64, scratch_operands = 0 : i64, tpu.core_type = #tpu.core_type<tc>, window_params = [{transform_indices = @transform_0, window_bounds = array<i64: 1, 4, 16>}, {transform_indices = @transform_1, window_bounds = array<i64: 16, 32>}, {transform_indices = @transform_2, window_bounds = array<i64: 1, 32>}, {transform_indices = @transform_3, window_bounds = array<i64: 1, 4, 32>}, {transform_indices = @transform_4, window_bounds = array<i64: 1, 1, 32>}]} {
    %c0 = arith.constant 0 : index
    %c0_0 = arith.constant 0 : index
    %c0_1 = arith.constant 0 : index
    %0 = vector.load %arg3[%c0, %c0_0, %c0_1] : memref<1x4x16xbf16, #tpu.memory_space<vmem>>, vector<1x4x16xbf16>
    %1 = vector.shape_cast %0 : vector<1x4x16xbf16> to vector<4x16xbf16>
    %c0_2 = arith.constant 0 : index
    %c0_3 = arith.constant 0 : index
    %2 = vector.load %arg4[%c0_2, %c0_3] : memref<16x32xbf16, #tpu.memory_space<vmem>>, vector<16x32xbf16>
    %cst = arith.constant dense<0.000000e+00> : vector<4x32xf32>
    %3 = tpu.matmul %1, %2, %cst {dimension_numbers = #tpu.dot_dimension_numbers<[1], [0], [0], [1], [0, 0, 1, 1], [], []>} : vector<4x16xbf16>, vector<16x32xbf16>, vector<4x32xf32> -> vector<4x32xf32>
    %c0_4 = arith.constant 0 : index
    %c0_5 = arith.constant 0 : index
    %4 = vector.load %arg5[%c0_4, %c0_5] : memref<1x32xf32, #tpu.memory_space<vmem>>, vector<1x32xf32>
    %5 = vector.broadcast %4 : vector<1x32xf32> to vector<4x32xf32>
    %6 = arith.addf %3, %5 : vector<4x32xf32>
    %cst_6 = arith.constant 0.000000e+00 : f32
    %7 = vector.broadcast %cst_6 : f32 to vector<4x32xf32>
    %8 = arith.maximumf %6, %7 : vector<4x32xf32>
    %9 = arith.truncf %8 : vector<4x32xf32> to vector<4x32xbf16>
    %c0_7 = arith.constant 0 : index
    %c0_8 = arith.constant 0 : index
    %c0_9 = arith.constant 0 : index
    %10 = vector.load %arg6[%c0_7, %c0_8, %c0_9] : memref<1x4x32xbf16, #tpu.memory_space<vmem>>, vector<1x4x32xbf16>
    %11 = vector.shape_cast %10 : vector<1x4x32xbf16> to vector<4x32xbf16>
    %12 = vector.shape_cast %9 : vector<4x32xbf16> to vector<1x4x32xbf16>
    tpu.vector_store %arg6[%c0_7, %c0_8, %c0_9], %12 {strides = array<i32>} : memref<1x4x32xbf16, #tpu.memory_space<vmem>>, vector<1x4x32xbf16>,
    %cst_10 = arith.constant dense<0.000000e+00> : vector<32xf32>
    %13 = vector.multi_reduction <add>, %8, %cst_10 [0] : vector<4x32xf32> to vector<32xf32>
    %14 = vector.shape_cast %13 : vector<32xf32> to vector<1x32xf32>
    %c0_i32 = arith.constant 0 : i32
    %15 = arith.cmpi eq, %arg2, %c0_i32 : i32
    %16 = arith.extui %15 : i1 to i32
    %c0_i32_11 = arith.constant 0 : i32
    %17 = arith.cmpi ne, %16, %c0_i32_11 : i32
    scf.if %17 {
      %c0_14 = arith.constant 0 : index
      %c0_15 = arith.constant 0 : index
      %c0_16 = arith.constant 0 : index
      %21 = vector.load %arg7[%c0_14, %c0_15, %c0_16] : memref<1x1x32xf32, #tpu.memory_space<vmem>>, vector<1x1x32xf32>
      %22 = vector.shape_cast %21 : vector<1x1x32xf32> to vector<1x32xf32>
      %23 = vector.shape_cast %14 : vector<1x32xf32> to vector<1x1x32xf32>
      tpu.vector_store %arg7[%c0_14, %c0_15, %c0_16], %23 {strides = array<i32>} : memref<1x1x32xf32, #tpu.memory_space<vmem>>, vector<1x1x32xf32>,
    } else {
    }
    %c0_i32_12 = arith.constant 0 : i32
    %18 = arith.cmpi sgt, %arg2, %c0_i32_12 : i32
    %19 = arith.extui %18 : i1 to i32
    %c0_i32_13 = arith.constant 0 : i32
    %20 = arith.cmpi ne, %19, %c0_i32_13 : i32
    scf.if %20 {
      %c0_14 = arith.constant 0 : index
      %c0_15 = arith.constant 0 : index
      %c0_16 = arith.constant 0 : index
      %21 = vector.load %arg7[%c0_14, %c0_15, %c0_16] : memref<1x1x32xf32, #tpu.memory_space<vmem>>, vector<1x1x32xf32>
      %22 = vector.shape_cast %21 : vector<1x1x32xf32> to vector<1x32xf32>
      %23 = arith.addf %22, %14 : vector<1x32xf32>
      %c0_17 = arith.constant 0 : index
      %c0_18 = arith.constant 0 : index
      %c0_19 = arith.constant 0 : index
      %24 = vector.load %arg7[%c0_17, %c0_18, %c0_19] : memref<1x1x32xf32, #tpu.memory_space<vmem>>, vector<1x1x32xf32>
      %25 = vector.shape_cast %24 : vector<1x1x32xf32> to vector<1x32xf32>
      %26 = vector.shape_cast %23 : vector<1x32xf32> to vector<1x1x32xf32>
      tpu.vector_store %arg7[%c0_17, %c0_18, %c0_19], %26 {strides = array<i32>} : memref<1x1x32xf32, #tpu.memory_space<vmem>>, vector<1x1x32xf32>,
    } else {
    }
    return
  }
  func.func @transform_0(%arg0: i32, %arg1: i32, %arg2: i32) -> (i32, i32, i32) {
    %c0_i32 = arith.constant 0 : i32
    %c0_i32_0 = arith.constant 0 : i32
    return %arg1, %arg2, %c0_i32 : i32, i32, i32
  }
  func.func @transform_1(%arg0: i32, %arg1: i32, %arg2: i32) -> (i32, i32) {
    %c0_i32 = arith.constant 0 : i32
    %c0_i32_0 = arith.constant 0 : i32
    return %c0_i32, %arg0 : i32, i32
  }
  func.func @transform_2(%arg0: i32, %arg1: i32, %arg2: i32) -> (i32, i32) {
    %c0_i32 = arith.constant 0 : i32
    %c0_i32_0 = arith.constant 0 : i32
    return %c0_i32, %arg0 : i32, i32
  }
  func.func @transform_3(%arg0: i32, %arg1: i32, %arg2: i32) -> (i32, i32, i32) {
    %c0_i32 = arith.constant 0 : i32
    return %arg1, %arg2, %arg0 : i32, i32, i32
  }
  func.func @transform_4(%arg0: i32, %arg1: i32, %arg2: i32) -> (i32, i32, i32) {
    %c0_i32 = arith.constant 0 : i32
    %c0_i32_0 = arith.constant 0 : i32
    return %arg1, %c0_i32, %arg0 : i32, i32, i32
  }
}

module attributes {stable_mosaic.version = 11 : i64} {
  func.func @_stage_kernel(%arg0: i32, %arg1: i32, %arg2: i32, %arg3: memref<1x4x32xbf16, #tpu.memory_space<vmem>>, %arg4: memref<32x64xbf16, #tpu.memory_space<vmem>>, %arg5: memref<1x64xf32, #tpu.memory_space<vmem>>, %arg6: memref<1x4x64xbf16, #tpu.memory_space<vmem>>, %arg7: memref<1x1x64xf32, #tpu.memory_space<vmem>>) attributes {dimension_semantics = [#tpu.dimension_semantics<parallel>, #tpu.dimension_semantics<parallel>, #tpu.dimension_semantics<arbitrary>], iteration_bounds = array<i64: 1, 2, 1>, scalar_prefetch = 0 : i64, scratch_operands = 0 : i64, tpu.core_type = #tpu.core_type<tc>, window_params = [{transform_indices = @transform_0, window_bounds = array<i64: 1, 4, 32>}, {transform_indices = @transform_1, window_bounds = array<i64: 32, 64>}, {transform_indices = @transform_2, window_bounds = array<i64: 1, 64>}, {transform_indices = @transform_3, window_bounds = array<i64: 1, 4, 64>}, {transform_indices = @transform_4, window_bounds = array<i64: 1, 1, 64>}]} {
    %c0 = arith.constant 0 : index
    %c0_0 = arith.constant 0 : index
    %c0_1 = arith.constant 0 : index
    %0 = vector.load %arg3[%c0, %c0_0, %c0_1] : memref<1x4x32xbf16, #tpu.memory_space<vmem>>, vector<1x4x32xbf16>
    %1 = vector.shape_cast %0 : vector<1x4x32xbf16> to vector<4x32xbf16>
    %c0_2 = arith.constant 0 : index
    %c0_3 = arith.constant 0 : index
    %2 = vector.load %arg4[%c0_2, %c0_3] : memref<32x64xbf16, #tpu.memory_space<vmem>>, vector<32x64xbf16>
    %cst = arith.constant dense<0.000000e+00> : vector<4x64xf32>
    %3 = tpu.matmul %1, %2, %cst {dimension_numbers = #tpu.dot_dimension_numbers<[1], [0], [0], [1], [0, 0, 1, 1], [], []>} : vector<4x32xbf16>, vector<32x64xbf16>, vector<4x64xf32> -> vector<4x64xf32>
    %c0_4 = arith.constant 0 : index
    %c0_5 = arith.constant 0 : index
    %4 = vector.load %arg5[%c0_4, %c0_5] : memref<1x64xf32, #tpu.memory_space<vmem>>, vector<1x64xf32>
    %5 = vector.broadcast %4 : vector<1x64xf32> to vector<4x64xf32>
    %6 = arith.addf %3, %5 : vector<4x64xf32>
    %cst_6 = arith.constant 0.000000e+00 : f32
    %7 = vector.broadcast %cst_6 : f32 to vector<4x64xf32>
    %8 = arith.maximumf %6, %7 : vector<4x64xf32>
    %9 = arith.truncf %8 : vector<4x64xf32> to vector<4x64xbf16>
    %c0_7 = arith.constant 0 : index
    %c0_8 = arith.constant 0 : index
    %c0_9 = arith.constant 0 : index
    %10 = vector.load %arg6[%c0_7, %c0_8, %c0_9] : memref<1x4x64xbf16, #tpu.memory_space<vmem>>, vector<1x4x64xbf16>
    %11 = vector.shape_cast %10 : vector<1x4x64xbf16> to vector<4x64xbf16>
    %12 = vector.shape_cast %9 : vector<4x64xbf16> to vector<1x4x64xbf16>
    tpu.vector_store %arg6[%c0_7, %c0_8, %c0_9], %12 {strides = array<i32>} : memref<1x4x64xbf16, #tpu.memory_space<vmem>>, vector<1x4x64xbf16>,
    %cst_10 = arith.constant dense<0.000000e+00> : vector<64xf32>
    %13 = vector.multi_reduction <add>, %8, %cst_10 [0] : vector<4x64xf32> to vector<64xf32>
    %14 = vector.shape_cast %13 : vector<64xf32> to vector<1x64xf32>
    %c0_i32 = arith.constant 0 : i32
    %15 = arith.cmpi eq, %arg2, %c0_i32 : i32
    %16 = arith.extui %15 : i1 to i32
    %c0_i32_11 = arith.constant 0 : i32
    %17 = arith.cmpi ne, %16, %c0_i32_11 : i32
    scf.if %17 {
      %c0_14 = arith.constant 0 : index
      %c0_15 = arith.constant 0 : index
      %c0_16 = arith.constant 0 : index
      %21 = vector.load %arg7[%c0_14, %c0_15, %c0_16] : memref<1x1x64xf32, #tpu.memory_space<vmem>>, vector<1x1x64xf32>
      %22 = vector.shape_cast %21 : vector<1x1x64xf32> to vector<1x64xf32>
      %23 = vector.shape_cast %14 : vector<1x64xf32> to vector<1x1x64xf32>
      tpu.vector_store %arg7[%c0_14, %c0_15, %c0_16], %23 {strides = array<i32>} : memref<1x1x64xf32, #tpu.memory_space<vmem>>, vector<1x1x64xf32>,
    } else {
    }
    %c0_i32_12 = arith.constant 0 : i32
    %18 = arith.cmpi sgt, %arg2, %c0_i32_12 : i32
    %19 = arith.extui %18 : i1 to i32
    %c0_i32_13 = arith.constant 0 : i32
    %20 = arith.cmpi ne, %19, %c0_i32_13 : i32
    scf.if %20 {
      %c0_14 = arith.constant 0 : index
      %c0_15 = arith.constant 0 : index
      %c0_16 = arith.constant 0 : index
      %21 = vector.load %arg7[%c0_14, %c0_15, %c0_16] : memref<1x1x64xf32, #tpu.memory_space<vmem>>, vector<1x1x64xf32>
      %22 = vector.shape_cast %21 : vector<1x1x64xf32> to vector<1x64xf32>
      %23 = arith.addf %22, %14 : vector<1x64xf32>
      %c0_17 = arith.constant 0 : index
      %c0_18 = arith.constant 0 : index
      %c0_19 = arith.constant 0 : index
      %24 = vector.load %arg7[%c0_17, %c0_18, %c0_19] : memref<1x1x64xf32, #tpu.memory_space<vmem>>, vector<1x1x64xf32>
      %25 = vector.shape_cast %24 : vector<1x1x64xf32> to vector<1x64xf32>
      %26 = vector.shape_cast %23 : vector<1x64xf32> to vector<1x1x64xf32>
      tpu.vector_store %arg7[%c0_17, %c0_18, %c0_19], %26 {strides = array<i32>} : memref<1x1x64xf32, #tpu.memory_space<vmem>>, vector<1x1x64xf32>,
    } else {
    }
    return
  }
  func.func @transform_0(%arg0: i32, %arg1: i32, %arg2: i32) -> (i32, i32, i32) {
    %c0_i32 = arith.constant 0 : i32
    %c0_i32_0 = arith.constant 0 : i32
    return %arg1, %arg2, %c0_i32 : i32, i32, i32
  }
  func.func @transform_1(%arg0: i32, %arg1: i32, %arg2: i32) -> (i32, i32) {
    %c0_i32 = arith.constant 0 : i32
    %c0_i32_0 = arith.constant 0 : i32
    return %c0_i32, %arg0 : i32, i32
  }
  func.func @transform_2(%arg0: i32, %arg1: i32, %arg2: i32) -> (i32, i32) {
    %c0_i32 = arith.constant 0 : i32
    %c0_i32_0 = arith.constant 0 : i32
    return %c0_i32, %arg0 : i32, i32
  }
  func.func @transform_3(%arg0: i32, %arg1: i32, %arg2: i32) -> (i32, i32, i32) {
    %c0_i32 = arith.constant 0 : i32
    return %arg1, %arg2, %arg0 : i32, i32, i32
  }
  func.func @transform_4(%arg0: i32, %arg1: i32, %arg2: i32) -> (i32, i32, i32) {
    %c0_i32 = arith.constant 0 : i32
    %c0_i32_0 = arith.constant 0 : i32
    return %arg1, %c0_i32, %arg0 : i32, i32, i32
  }
}

module attributes {stable_mosaic.version = 11 : i64} {
  func.func @_bnneck_cls_kernel(%arg0: i32, %arg1: memref<2x64xf32, #tpu.memory_space<vmem>>, %arg2: memref<1x64xf32, #tpu.memory_space<vmem>>, %arg3: memref<1x64xf32, #tpu.memory_space<vmem>>, %arg4: memref<64x128xf32, #tpu.memory_space<vmem>>, %arg5: memref<2x64xf32, #tpu.memory_space<vmem>>, %arg6: memref<2x128xf32, #tpu.memory_space<vmem>>) attributes {dimension_semantics = [#tpu.dimension_semantics<arbitrary>], iteration_bounds = array<i64: 1>, scalar_prefetch = 0 : i64, scratch_operands = 0 : i64, tpu.core_type = #tpu.core_type<tc>, window_params = [{pipeline_mode = #tpu.pipeline_mode<synchronous>, transform_indices = @transform_0, window_bounds = array<i64: 2, 64>}, {pipeline_mode = #tpu.pipeline_mode<synchronous>, transform_indices = @transform_1, window_bounds = array<i64: 1, 64>}, {pipeline_mode = #tpu.pipeline_mode<synchronous>, transform_indices = @transform_2, window_bounds = array<i64: 1, 64>}, {transform_indices = @transform_3, window_bounds = array<i64: 64, 128>}, {pipeline_mode = #tpu.pipeline_mode<synchronous>, transform_indices = @transform_4, window_bounds = array<i64: 2, 64>}, {transform_indices = @transform_5, window_bounds = array<i64: 2, 128>}]} {
    %c0 = arith.constant 0 : index
    %c0_0 = arith.constant 0 : index
    %0 = vector.load %arg1[%c0, %c0_0] : memref<2x64xf32, #tpu.memory_space<vmem>>, vector<2x64xf32>
    %cst = arith.constant dense<0.000000e+00> : vector<64xf32>
    %1 = vector.multi_reduction <add>, %0, %cst [0] : vector<2x64xf32> to vector<64xf32>
    %2 = vector.shape_cast %1 : vector<64xf32> to vector<1x64xf32>
    %cst_1 = arith.constant 2.000000e+00 : f32
    %3 = vector.broadcast %cst_1 : f32 to vector<1x64xf32>
    %4 = arith.divf %2, %3 : vector<1x64xf32>
    %5 = vector.broadcast %4 : vector<1x64xf32> to vector<2x64xf32>
    %6 = arith.subf %0, %5 : vector<2x64xf32>
    %7 = arith.mulf %6, %6 : vector<2x64xf32>
    %cst_2 = arith.constant dense<0.000000e+00> : vector<64xf32>
    %8 = vector.multi_reduction <add>, %7, %cst_2 [0] : vector<2x64xf32> to vector<64xf32>
    %9 = vector.shape_cast %8 : vector<64xf32> to vector<1x64xf32>
    %cst_3 = arith.constant 2.000000e+00 : f32
    %10 = vector.broadcast %cst_3 : f32 to vector<1x64xf32>
    %11 = arith.divf %9, %10 : vector<1x64xf32>
    %12 = vector.broadcast %4 : vector<1x64xf32> to vector<2x64xf32>
    %13 = arith.subf %0, %12 : vector<2x64xf32>
    %cst_4 = arith.constant 9.99999974E-6 : f32
    %14 = vector.broadcast %cst_4 : f32 to vector<1x64xf32>
    %15 = arith.addf %11, %14 : vector<1x64xf32>
    %16 = math.rsqrt %15 : vector<1x64xf32>
    %17 = vector.broadcast %16 : vector<1x64xf32> to vector<2x64xf32>
    %18 = arith.mulf %13, %17 : vector<2x64xf32>
    %c0_5 = arith.constant 0 : index
    %c0_6 = arith.constant 0 : index
    %19 = vector.load %arg2[%c0_5, %c0_6] : memref<1x64xf32, #tpu.memory_space<vmem>>, vector<1x64xf32>
    %20 = vector.broadcast %19 : vector<1x64xf32> to vector<2x64xf32>
    %21 = arith.mulf %18, %20 : vector<2x64xf32>
    %c0_7 = arith.constant 0 : index
    %c0_8 = arith.constant 0 : index
    %22 = vector.load %arg3[%c0_7, %c0_8] : memref<1x64xf32, #tpu.memory_space<vmem>>, vector<1x64xf32>
    %23 = vector.broadcast %22 : vector<1x64xf32> to vector<2x64xf32>
    %24 = arith.addf %21, %23 : vector<2x64xf32>
    %c0_i32 = arith.constant 0 : i32
    %25 = arith.cmpi eq, %arg0, %c0_i32 : i32
    %26 = arith.extui %25 : i1 to i32
    %c0_i32_9 = arith.constant 0 : i32
    %27 = arith.cmpi ne, %26, %c0_i32_9 : i32
    scf.if %27 {
      %c0_15 = arith.constant 0 : index
      %c0_16 = arith.constant 0 : index
      %31 = vector.load %arg5[%c0_15, %c0_16] : memref<2x64xf32, #tpu.memory_space<vmem>>, vector<2x64xf32>
      tpu.vector_store %arg5[%c0_15, %c0_16], %24 {strides = array<i32>} : memref<2x64xf32, #tpu.memory_space<vmem>>, vector<2x64xf32>,
    } else {
    }
    %c0_10 = arith.constant 0 : index
    %c0_11 = arith.constant 0 : index
    %28 = vector.load %arg4[%c0_10, %c0_11] : memref<64x128xf32, #tpu.memory_space<vmem>>, vector<64x128xf32>
    %cst_12 = arith.constant dense<0.000000e+00> : vector<2x128xf32>
    %29 = tpu.matmul %24, %28, %cst_12 {dimension_numbers = #tpu.dot_dimension_numbers<[1], [0], [0], [1], [0, 0, 1, 1], [], []>} : vector<2x64xf32>, vector<64x128xf32>, vector<2x128xf32> -> vector<2x128xf32>
    %c0_13 = arith.constant 0 : index
    %c0_14 = arith.constant 0 : index
    %30 = vector.load %arg6[%c0_13, %c0_14] : memref<2x128xf32, #tpu.memory_space<vmem>>, vector<2x128xf32>
    tpu.vector_store %arg6[%c0_13, %c0_14], %29 {strides = array<i32>} : memref<2x128xf32, #tpu.memory_space<vmem>>, vector<2x128xf32>,
    return
  }
  func.func @transform_0(%arg0: i32) -> (i32, i32) {
    %c0_i32 = arith.constant 0 : i32
    %c0_i32_0 = arith.constant 0 : i32
    %c0_i32_1 = arith.constant 0 : i32
    return %c0_i32, %c0_i32_0 : i32, i32
  }
  func.func @transform_1(%arg0: i32) -> (i32, i32) {
    %c0_i32 = arith.constant 0 : i32
    %c0_i32_0 = arith.constant 0 : i32
    %c0_i32_1 = arith.constant 0 : i32
    return %c0_i32, %c0_i32_0 : i32, i32
  }
  func.func @transform_2(%arg0: i32) -> (i32, i32) {
    %c0_i32 = arith.constant 0 : i32
    %c0_i32_0 = arith.constant 0 : i32
    %c0_i32_1 = arith.constant 0 : i32
    return %c0_i32, %c0_i32_0 : i32, i32
  }
  func.func @transform_3(%arg0: i32) -> (i32, i32) {
    %c0_i32 = arith.constant 0 : i32
    %c0_i32_0 = arith.constant 0 : i32
    return %c0_i32, %arg0 : i32, i32
  }
  func.func @transform_4(%arg0: i32) -> (i32, i32) {
    %c0_i32 = arith.constant 0 : i32
    %c0_i32_0 = arith.constant 0 : i32
    %c0_i32_1 = arith.constant 0 : i32
    return %c0_i32, %c0_i32_0 : i32, i32
  }
  func.func @transform_5(%arg0: i32) -> (i32, i32) {
    %c0_i32 = arith.constant 0 : i32
    %c0_i32_0 = arith.constant 0 : i32
    return %c0_i32, %arg0 : i32, i32
  }
}

</mosaic_0001>

<bundles_post_ra>
// kernel: backbone_forward.7
= control target key start
LH: loop header
LB: loop body
LE: loop exit
PB: predicated region body
PF: predicated region fallthrough
CT: control target
= control target key end

     0   :  { %s624_s15 = smov 0   ;;  %s626_s16 = smov 0   ;;  %s666_s0 = inlined_call_operand.vmem [shape: bf16[2,4,16], index: 0, kind: input, shape index: {}]   ;;  %s667_s1 = inlined_call_operand.vmem [shape: bf16[16,32], index: 1, kind: input, shape index: {}]   ;;  %s668_s2 = inlined_call_operand.vmem [shape: f32[1,32], index: 2, kind: input, shape index: {}]   ;;  %s669_s3 = inlined_call_operand.vmem [shape: bf16[2,4,32], index: 3, kind: output, shape index: {0}]   ;;  %s670_s4 = inlined_call_operand.vmem [shape: f32[2,1,32], index: 4, kind: output, shape index: {1}]  }
   0x1   :  { %s628_s17 = smov 0  }
   0x2 LB: > { %s30_s18 = sadd.s32 1, %s591_s16  ;;  %p530_p0 = scmp.ge.s32.totalorder %s595_s17, 1  ;;  %s595_s17 = sphi %s628_s17, %s15_s17   ;;  %s591_s16 = sphi %s626_s16, %s672_s16   ;;  %s587_s15 = sphi %s624_s15, %s671_s15  }
   0x3   : > { %p32_p1 = scmp.ge.s32.totalorder %s30_s18, 2  ;;  %p211_p2 = scmp.lt.s32.totalorder %s595_s17, 3 }
   0x5   : > { %s674_s18 = smov (%p32_p1, %s30_s18), 0  ;;  %p212_p3 = pnand %p530_p0, %p211_p2 }
   0x6   : > { %v572_v0 = vld [vmem:[%s667_s1] sm:$0xff] (!%p212_p3)   ;;  %v597_v1 = vmov (!%p212_p3), 0.0   ;;  %p257_p4 = scmp.lt.s32.totalorder (!%p212_p3), %s587_s15, 1  ;;  %vm598_vm0 = vmmov (!%p212_p3), 0   ;;  %vm304_vm1 = vcmask (!%p212_p3), 130048   ;;  %vm352_vm2 = vcmask (!%p212_p3), 257024  }
   0x7   : > { %215 = sbr.rel (%p212_p3) target bundleno = 248 (0xf8), region = 32  ;;  %540 = vmatprep.subr.bf16.mxu0 (!%p212_p3), %v597_v1  ;;  %542 = vmatprep.mubr.msk.bf16.mxu0 (!%p212_p3), %vm598_vm0, %v597_v1  ;;  %v533_v3 = vld [vmem:[%s668_s2] ss:$0 sm:$0xff] (!%p212_p3)  ;;  %vm350_vm3 = vcmask (!%p212_p3), 254976   ;;  %vm364_vm4 = vcmask (!%p212_p3), 253952  }
   0x8   : > { %541 = vmatpush3.bf16.msra.mxu0 (!%p212_p3), %v572_v0 }
   0xe   : > { %s676_s15 = smov (!%p257_p4, %s587_s15), 1 }
   0xf   : > { %s531_s21 = sshll.u32 %s676_s15, 1  ;;  %s286_s6 = scalar_lea.vmem %s670_s4, %s676_s15 }
  0x10   : > { %s263_s24 = scalar_lea.vmem %s666_s0, %s531_s21  ;;  %s280_s29 = scalar_lea.vmem %s669_s3, %s531_s21 }
  0x11   : > { %v288_v2 = vld [vmem:[%s263_s24] sm:$0x3] }
  0x12   : > { %543 = vmatmul.mubr.msk.bf16.vlgmr.msra.gmra.mrb[0].mxu0 %vm304_vm1, %v288_v2 }
  0xe5   : > { %v342_v4 = vpop.f32.mrb[0].mxu0 }
  0xe6   : > { %v343_v5 = vadd.f32 %v533_v3, %v342_v4  ;;  %v544_v6 = vpop.f32.mrb[1].mxu0 }
  0xe7   : > { %v345_v7 = vpop.f32.mrb[2].mxu0 }
  0xe8   : > { %v348_v8 = vmax.f32 %v343_v5, 0.0  ;;  %v545_v9 = vpop.f32.mrb[3].mxu0 }
  0xea   : > { %v349_v10 = vpack.c.bf16 %v348_v8, %v348_v8  ;;  %v353_v11 = vsel %vm352_vm2, %v348_v8, 0.0 }
  0xeb   : > { %v354_v12 = vrot.slane %v353_v11, 4 }
  0xec   : > { %351 = vst.msk [vmem:[%s280_s29] sm:$0x3] %vm350_vm3, %v349_v10 }
  0xed   : > { %v355_v13 = vadd.f32 %v354_v12, %v353_v11 }
  0xef   : > { %v356_v14 = vrot.slane %v355_v13, 2 }
  0xf1   : > { %v357_v15 = vadd.f32 %v356_v14, %v355_v13 }
  0xf3   : > { %v358_v16 = vrot.slane %v357_v15, 1 }
  0xf5   : > { %v359_v17 = vadd.f32 %v358_v16, %v357_v15 }
  0xf7   : > { %365 = vst.msk [vmem:[%s286_s6] sm:$0x1] %vm364_vm4, %v359_v17 }
  0xf8 PF: > { %s15_s17 = sadd.s32 1, %s595_s17   ;;  %s671_s15 = smov %s591_s16 }
  0xf9   : > { %p12_p5 = scmp.ge.s32.totalorder %s15_s17, 4   ;;  %s672_s16 = smov %s674_s18 }
  0xfb   :  { %14 = sbr.rel (!%p12_p5) target bundleno = 2 (0x2), region = 88 }

// kernel: backbone_forward.5
= control target key start
LH: loop header
LB: loop body
LE: loop exit
PB: predicated region body
PF: predicated region fallthrough
CT: control target
= control target key end

     0   :  { %s802_s15 = smov 0   ;;  %s804_s16 = smov 0   ;;  %s874_s0 = inlined_call_operand.vmem [shape: bf16[2,64,4], index: 0, kind: input, shape index: {}]   ;;  %s875_s1 = inlined_call_operand.vmem [shape: bf16[4,8], index: 1, kind: input, shape index: {}]   ;;  %s876_s2 = inlined_call_operand.vmem [shape: f32[1,8], index: 2, kind: input, shape index: {}]   ;;  %s877_s3 = inlined_call_operand.vmem [shape: bf16[2,64,8], index: 3, kind: output, shape index: {0}]   ;;  %s878_s4 = inlined_call_operand.vmem [shape: f32[2,1,8], index: 4, kind: output, shape index: {1}]  }
   0x1   :  { %s806_s17 = smov 0  }
   0x2 LB: > { %s30_s18 = sadd.s32 1, %s771_s16  ;;  %p672_p0 = scmp.ge.s32.totalorder %s775_s17, 1  ;;  %s775_s17 = sphi %s806_s17, %s15_s17   ;;  %s771_s16 = sphi %s804_s16, %s880_s16   ;;  %s767_s15 = sphi %s802_s15, %s879_s15  }
   0x3   : > { %p32_p1 = scmp.ge.s32.totalorder %s30_s18, 2  ;;  %p214_p2 = scmp.lt.s32.totalorder %s775_s17, 3 }
   0x5   : > { %s882_s18 = smov (%p32_p1, %s30_s18), 0  ;;  %p215_p3 = pnand %p672_p0, %p214_p2 }
   0x6   : > { %v309_v0 = vld [vmem:[%s875_s1] sm:$0x3] (!%p215_p3)  ;;  %vm350_vm0 = vcmask (!%p215_p3), 1041408   ;;  %p265_p4 = scmp.lt.s32.totalorder (!%p215_p3), %s767_s15, 1  ;;  %vm337_vm1 = vcmask (!%p215_p3), 31744   ;;  %vm459_vm2 = vcmask (!%p215_p3), 60416  }
   0x7   : > { %218 = sbr.rel (%p215_p3) target bundleno = 266 (0x10a), region = 32  ;;  %723 = vmatprep.subr.msk.bf16.mxu0 (!%p215_p3), %vm350_vm0, %v309_v0  ;;  %v352_v1 = vsel (!%p215_p3), %vm350_vm0, %v309_v0, 0  ;;  %724 = vmatprep.subr.msk.bf16.mxu1 (!%p215_p3), %vm350_vm0, %v309_v0  ;;  %v677_v6 = vld [vmem:[%s876_s2] ss:$0 sm:$0xff] (!%p215_p3)  ;;  %vm468_vm3 = vcmask (!%p215_p3), 64512   ;;  %vm494_vm4 = vcmask (!%p215_p3), 57344  }
   0x8   : > { %712 = vmatpush3.bf16.msra.mxu0 (!%p215_p3), %v352_v1  ;;  %722 = vmatpush3.bf16.msra.mxu1 (!%p215_p3), %v352_v1 }
   0xe   : > { %s884_s15 = smov (!%p265_p4, %s767_s15), 1 }
   0xf   : > { %s696_s21 = sshll.u32 %s884_s15, 5  ;;  %s299_s6 = scalar_lea.vmem %s878_s4, %s884_s15 }
  0x10   : > { %s272_s24 = scalar_lea.vmem %s874_s0, %s696_s21  ;;  %s835_s29 = scalar_lea.vmem %s877_s3, %s696_s21 }
  0x11   : > { %v749_v2 = vld [vmem:[%s272_s24] sm:$0xff]   ;;  %v750_v3 = vld [vmem:[%s272_s24 + $0x8] sm:$0xff]   ;;  %v751_v4 = vld [vmem:[%s272_s24 + $0x10] sm:$0xff]  }
  0x12   : > { %713 = vmatprep.mubr.msk.bf16.mxu0 %vm337_vm1, %v749_v2  ;;  %v752_v5 = vld [vmem:[%s272_s24 + $0x18] sm:$0xff]   ;;  %717 = vmatprep.mubr.msk.bf16.mxu1 %vm337_vm1, %v751_v4 }
  0x13   : > { %714 = vmatmul.mubr.msk.bf16.vlgmr.msra.gmra.mrb[0].mxu0 %vm337_vm1, %v750_v3  ;;  %718 = vmatmul.mubr.msk.bf16.vlgmr.msra.gmra.mrb[0].mxu1 %vm337_vm1, %v752_v5 }
  0xe6   : > { %v715_v7 = vpop.f32.mrb[0].mxu0  ;;  %v719_v12 = vpop.f32.mrb[0].mxu1 }
  0xe7   : > { %v397_v8 = vadd.f32 %v715_v7, %v677_v6  ;;  %v388_v9 = vpop.f32.mrb[1].mxu0  ;;  %v413_v16 = vadd.f32 %v719_v12, %v677_v6  ;;  %v404_v17 = vpop.f32.mrb[1].mxu1 }
  0xe8   : > { %v389_v10 = vadd.f32 %v677_v6, %v388_v9  ;;  %v716_v11 = vpop.f32.mrb[2].mxu0  ;;  %v405_v20 = vadd.f32 %v677_v6, %v404_v17  ;;  %v720_v21 = vpop.f32.mrb[2].mxu1 }
  0xe9   : > { %v421_v13 = vmax.f32 %v397_v8, 0.0  ;;  %v400_v14 = vadd.f32 %v716_v11, %v677_v6  ;;  %v391_v15 = vpop.f32.mrb[3].mxu0  ;;  %v425_v24 = vmax.f32 %v413_v16, 0.0  ;;  %v407_v25 = vpop.f32.mrb[3].mxu1  ;;  %v416_v36 = vadd.f32 %v720_v21, %v677_v6 }
  0xea   : > { %v419_v18 = vmax.f32 %v389_v10, 0.0  ;;  %v392_v19 = vadd.f32 %v677_v6, %v391_v15  ;;  %v423_v28 = vmax.f32 %v405_v20, 0.0  ;;  %v408_v37 = vadd.f32 %v677_v6, %v407_v25 }
  0xeb   : > { %v700_v22 = vpack.c.bf16 %v421_v13, %v421_v13  ;;  %v422_v23 = vmax.f32 %v400_v14, 0.0  ;;  %v704_v30 = vpack.c.bf16 %v425_v24, %v425_v24  ;;  %v472_v38 = vsel %vm468_vm3, %v421_v13, 0.0 }
  0xec   : > { %v698_v26 = vpack.c.bf16 %v419_v18, %v419_v18  ;;  %v420_v27 = vmax.f32 %v392_v19, 0.0  ;;  %v469_v31 = vsel %vm468_vm3, %v419_v18, 0.0  ;;  %v702_v34 = vpack.c.bf16 %v423_v28, %v423_v28 }
  0xed   : > { %462 = vst.msk [vmem:[%s835_s29 + $0x8] sm:$0xf] %vm459_vm2, %v700_v22  ;;  %v701_v29 = vpack.c.bf16 %v422_v23, %v422_v23  ;;  %466 = vst.msk [vmem:[%s835_s29 + $0x18] sm:$0xf] %vm459_vm2, %v704_v30  ;;  %v426_v40 = vmax.f32 %v416_v36, 0.0  ;;  %v424_v41 = vmax.f32 %v408_v37, 0.0 }
  0xee   : > { %460 = vst.msk [vmem:[%s835_s29] sm:$0xf] %vm459_vm2, %v698_v26  ;;  %v699_v32 = vpack.c.bf16 %v420_v27, %v420_v27  ;;  %v470_v33 = vsel %vm468_vm3, %v420_v27, 0.0  ;;  %464 = vst.msk [vmem:[%s835_s29 + $0x10] sm:$0xf] %vm459_vm2, %v702_v34  ;;  %v474_v42 = vsel %vm468_vm3, %v422_v23, 0.0 }
  0xef   : > { %463 = vst.msk [vmem:[%s835_s29 + $0xc] sm:$0xf] %vm459_vm2, %v701_v29  ;;  %v471_v35 = vadd.f32 %v470_v33, %v469_v31  ;;  %v476_v43 = vsel %vm468_vm3, %v423_v28, 0.0  ;;  %v705_v45 = vpack.c.bf16 %v426_v40, %v426_v40  ;;  %v703_v46 = vpack.c.bf16 %v424_v41, %v424_v41 }
  0xf0   : > { %461 = vst.msk [vmem:[%s835_s29 + $0x4] sm:$0xf] %vm459_vm2, %v699_v32  ;;  %v478_v48 = vsel %vm468_vm3, %v424_v41, 0.0  ;;  %v480_v50 = vsel %vm468_vm3, %v425_v24, 0.0  ;;  %v482_v52 = vsel %vm468_vm3, %v426_v40, 0.0 }
  0xf1   : > { %v473_v39 = vadd.f32 %v472_v38, %v471_v35  ;;  %467 = vst.msk [vmem:[%s835_s29 + $0x1c] sm:$0xf] %vm459_vm2, %v705_v45  ;;  %465 = vst.msk [vmem:[%s835_s29 + $0x14] sm:$0xf] %vm459_vm2, %v703_v46 }
  0xf3   : > { %v475_v44 = vadd.f32 %v474_v42, %v473_v39 }
  0xf5   : > { %v477_v47 = vadd.f32 %v476_v43, %v475_v44 }
  0xf7   : > { %v479_v49 = vadd.f32 %v478_v48, %v477_v47 }
  0xf9   : > { %v481_v51 = vadd.f32 %v480_v50, %v479_v49 }
  0xfb   : > { %v483_v53 = vadd.f32 %v482_v52, %v481_v51 }
  0xfd   : > { %v484_v54 = vrot.slane %v483_v53, 4 }
  0xff   : > { %v485_v55 = vadd.f32 %v484_v54, %v483_v53 }
 0x101   : > { %v486_v56 = vrot.slane %v485_v55, 2 }
 0x103   : > { %v487_v57 = vadd.f32 %v486_v56, %v485_v55 }
 0x105   : > { %v488_v58 = vrot.slane %v487_v57, 1 }
 0x107   : > { %v489_v59 = vadd.f32 %v488_v58, %v487_v57 }
 0x109   : > { %495 = vst.msk [vmem:[%s299_s6] sm:$0x1] %vm494_vm4, %v489_v59 }
 0x10a PF: > { %s15_s17 = sadd.s32 1, %s775_s17   ;;  %s879_s15 = smov %s771_s16 }
 0x10b   : > { %p12_p5 = scmp.ge.s32.totalorder %s15_s17, 4   ;;  %s880_s16 = smov %s882_s18 }
 0x10d   :  { %14 = sbr.rel (!%p12_p5) target bundleno = 2 (0x2), region = 88 }

// kernel: backbone_forward.6
= control target key start
LH: loop header
LB: loop body
LE: loop exit
PB: predicated region body
PF: predicated region fallthrough
CT: control target
= control target key end

     0   :  { %s672_s15 = smov 0   ;;  %s674_s16 = smov 0   ;;  %s718_s0 = inlined_call_operand.vmem [shape: bf16[2,16,8], index: 0, kind: input, shape index: {}]   ;;  %s719_s1 = inlined_call_operand.vmem [shape: bf16[8,16], index: 1, kind: input, shape index: {}]   ;;  %s720_s2 = inlined_call_operand.vmem [shape: f32[1,16], index: 2, kind: input, shape index: {}]   ;;  %s721_s3 = inlined_call_operand.vmem [shape: bf16[2,16,16], index: 3, kind: output, shape index: {0}]   ;;  %s722_s4 = inlined_call_operand.vmem [shape: f32[2,1,16], index: 4, kind: output, shape index: {1}]  }
   0x1   :  { %s676_s17 = smov 0  }
   0x2 LB: > { %s30_s18 = sadd.s32 1, %s639_s16  ;;  %p570_p0 = scmp.ge.s32.totalorder %s643_s17, 1  ;;  %s643_s17 = sphi %s676_s17, %s15_s17   ;;  %s639_s16 = sphi %s674_s16, %s724_s16   ;;  %s635_s15 = sphi %s672_s15, %s723_s15  }
   0x3   : > { %p32_p1 = scmp.ge.s32.totalorder %s30_s18, 2  ;;  %p214_p2 = scmp.lt.s32.totalorder %s643_s17, 3 }
   0x5   : > { %s726_s18 = smov (%p32_p1, %s30_s18), 0  ;;  %p215_p3 = pnand %p570_p0, %p214_p2 }
   0x6   : > { %v303_v0 = vld [vmem:[%s719_s1] sm:$0xf] (!%p215_p3)  ;;  %vm320_vm0 = vcmask (!%p215_p3), 1043456   ;;  %p265_p4 = scmp.lt.s32.totalorder (!%p215_p3), %s635_s15, 1  ;;  %v645_v1 = vmov (!%p215_p3), 0.0   ;;  %vm646_vm1 = vmmov (!%p215_p3), 0  }
   0x7   : > { %218 = sbr.rel (%p215_p3) target bundleno = 252 (0xfc), region = 32  ;;  %588 = vmatprep.subr.bf16.mxu0 (!%p215_p3), %v645_v1  ;;  %v322_v2 = vsel (!%p215_p3), %vm320_vm0, %v303_v0, 0  ;;  %590 = vmatprep.mubr.msk.bf16.mxu0 (!%p215_p3), %vm646_vm1, %v645_v1  ;;  %vm316_vm2 = vcmask (!%p215_p3), 64512   ;;  %v575_v4 = vld [vmem:[%s720_s2] ss:$0 sm:$0xff] (!%p215_p3)  ;;  %vm375_vm3 = vcmask (!%p215_p3), 125952  }
   0x8   : > { %589 = vmatpush3.bf16.msra.mxu0 (!%p215_p3), %v322_v2  ;;  %vm378_vm4 = vcmask (!%p215_p3), 130048   ;;  %vm392_vm5 = vcmask (!%p215_p3), 122880  }
   0xe   : > { %s728_s15 = smov (!%p265_p4, %s635_s15), 1 }
   0xf   : > { %s582_s21 = sshll.u32 %s728_s15, 3  ;;  %s299_s6 = scalar_lea.vmem %s722_s4, %s728_s15 }
  0x10   : > { %s272_s24 = scalar_lea.vmem %s718_s0, %s582_s21  ;;  %s292_s29 = scalar_lea.vmem %s721_s3, %s582_s21 }
  0x11   : > { %v620_v3 = vld [vmem:[%s272_s24] sm:$0xff]  }
  0x12   : > { %591 = vmatmul.mubr.msk.bf16.vlgmr.msra.gmra.mrb[0].mxu0 %vm316_vm2, %v620_v3 }
  0xe5   : > { %v358_v5 = vpop.f32.mrb[0].mxu0 }
  0xe6   : > { %v359_v6 = vadd.f32 %v575_v4, %v358_v5  ;;  %v592_v7 = vpop.f32.mrb[1].mxu0 }
  0xe7   : > { %v361_v8 = vpop.f32.mrb[2].mxu0 }
  0xe8   : > { %v365_v9 = vmax.f32 %v359_v6, 0.0  ;;  %v362_v10 = vadd.f32 %v575_v4, %v361_v8  ;;  %v593_v11 = vpop.f32.mrb[3].mxu0 }
  0xea   : > { %v584_v12 = vpack.c.bf16 %v365_v9, %v365_v9  ;;  %v366_v13 = vmax.f32 %v362_v10, 0.0  ;;  %v379_v14 = vsel %vm378_vm4, %v365_v9, 0.0 }
  0xec   : > { %376 = vst.msk [vmem:[%s292_s29] sm:$0xf] %vm375_vm3, %v584_v12  ;;  %v585_v15 = vpack.c.bf16 %v366_v13, %v366_v13  ;;  %v380_v16 = vsel %vm378_vm4, %v366_v13, 0.0 }
  0xed   : > { %v381_v17 = vadd.f32 %v380_v16, %v379_v14 }
  0xee   : > { %377 = vst.msk [vmem:[%s292_s29 + $0x4] sm:$0xf] %vm375_vm3, %v585_v15 }
  0xef   : > { %v382_v18 = vrot.slane %v381_v17, 4 }
  0xf1   : > { %v383_v19 = vadd.f32 %v382_v18, %v381_v17 }
  0xf3   : > { %v384_v20 = vrot.slane %v383_v19, 2 }
  0xf5   : > { %v385_v21 = vadd.f32 %v384_v20, %v383_v19 }
  0xf7   : > { %v386_v22 = vrot.slane %v385_v21, 1 }
  0xf9   : > { %v387_v23 = vadd.f32 %v386_v22, %v385_v21 }
  0xfb   : > { %393 = vst.msk [vmem:[%s299_s6] sm:$0x1] %vm392_vm5, %v387_v23 }
  0xfc PF: > { %s15_s17 = sadd.s32 1, %s643_s17   ;;  %s723_s15 = smov %s639_s16 }
  0xfd   : > { %p12_p5 = scmp.ge.s32.totalorder %s15_s17, 4   ;;  %s724_s16 = smov %s726_s18 }
  0xff   :  { %14 = sbr.rel (!%p12_p5) target bundleno = 2 (0x2), region = 88 }

// kernel: backbone_forward.8
= control target key start
LH: loop header
LB: loop body
LE: loop exit
PB: predicated region body
PF: predicated region fallthrough
CT: control target
= control target key end

     0   :  { %10 = vsyncpa [#allocation3], 0  ;;  %s846_s0 = inlined_call_operand.vmem [shape: bf16[2,4,32], index: 0, kind: input, shape index: {}]   ;;  %s847_s1 = inlined_call_operand.vmem [shape: bf16[32,64], index: 1, kind: input, shape index: {}]   ;;  %s848_s2 = inlined_call_operand.vmem [shape: f32[1,64], index: 2, kind: input, shape index: {}]   ;;  %s849_s3 = inlined_call_operand.hbm [shape: bf16[2,4,64], index: 3, kind: output, shape index: {0}]   ;;  %s850_s4 = inlined_call_operand.vmem [shape: f32[2,1,64], index: 4, kind: output, shape index: {1}]  }
   0x1   :  { %12 = vsyncpa [#allocation3 + $0x1], 0  ;;  %s718_s15 = smov 0   ;;  %s720_s16 = smov 0  }
   0x2   :  { %s722_s17 = smov 0   ;;  %s724_s18 = smov 0  }
   0x3   :  { %s726_s19 = smov 0   ;;  %s728_s20 = smov 0  }
   0x4 LB: > { %s523_s21 = sadd.s32 4294967295, %s688_s20   ;;  %s524_s22 = sadd.s32 4294967294, %s688_s20   ;;  %s688_s20 = sphi %s728_s20, %s18_s20   ;;  %s684_s19 = sphi %s726_s19, %s857_s19   ;;  %s680_s18 = sphi %s724_s18, %s856_s18   ;;  %s676_s17 = sphi %s722_s17, %s855_s17   ;;  %s672_s16 = sphi %s720_s16, %s854_s16   ;;  %s668_s15 = sphi %s718_s15, %s853_s15  }
   0x5   : > { %s33_s23 = sadd.s32 1, %s684_s19  ;;  %s128_s24 = sadd.s32 1, %s676_s17 }
   0x6   : > { %p35_p0 = scmp.ge.s32.totalorder %s33_s23, 2  ;;  %p138_p1 = scmp.ne.s32.totalorder %s676_s17, %s672_s16 }
   0x7   : > { %p139_p2 = scmp.eq.s32.totalorder %s523_s21, 1  ;;  %p144_p3 = scmp.ne.s32.totalorder %s672_s16, %s668_s15 }
   0x8   : > { %s859_s23 = smov (%p35_p0, %s33_s23), 0  ;;  %p145_p5 = scmp.eq.s32.totalorder %s524_s22, 1 }
   0x9   : > { %p758_p4 = por %p139_p2, %p138_p1  ;;  %s121_s26 = ssub.s32 %s684_s19, %s859_s23 }
   0xa   : > { %p529_p6 = scmp.ge.s32.totalorder %s688_s20, 1  ;;  %p126_p7 = scmp.eq.s32.totalorder %s121_s26, 0 }
   0xb   : > { %p765_p8 = por %p145_p5, %p144_p3  ;;  %p214_p9 = scmp.lt.s32.totalorder %s688_s20, 3 }
   0xc   : > { %s771_s28 = scalar_select %p126_p7, %s676_s17, %s128_s24  }
   0xd   : > { %p215_p10 = pnand %p529_p6, %p214_p9 }
   0xe   : > { %v608_v0 = vld [vmem:[%s847_s1] sm:$0xff] (!%p215_p10)   ;;  %v690_v1 = vmov (!%p215_p10), 0.0   ;;  %v609_v2 = vld [vmem:[%s847_s1 + $0x8] sm:$0xff] (!%p215_p10)   ;;  %vm691_vm0 = vmmov (!%p215_p10), 0   ;;  %p255_p11 = scmp.lt.s32.totalorder (!%p215_p10), %s680_s18, 1  ;;  %vm300_vm1 = vcmask (!%p215_p10), 261120  }
   0xf   : > { %218 = sbr.rel (%p215_p10) target bundleno = 268 (0x10c), region = 32  ;;  %543 = vmatprep.subr.bf16.mxu0 (!%p215_p10), %v690_v1  ;;  %547 = vmatprep.mubr.msk.bf16.mxu0 (!%p215_p10), %vm691_vm0, %v690_v1  ;;  %s244_s12 = sand.u32 (!%p215_p10), 1, %s672_s16   ;;  %v532_v4 = vld [vmem:[%s848_s2] ss:$0 sm:$0xff] (!%p215_p10)  ;;  %vm348_vm2 = vcmask (!%p215_p10), 519168   ;;  %vm346_vm3 = vcmask (!%p215_p10), 517120  }
  0x10   : > { %544 = vmatpush3.bf16.msra.mxu0 (!%p215_p10), %v608_v0  ;;  %s530_s21 = sshll.u32 (!%p215_p10), %s244_s12, 1  ;;  %s537_s22 = sshll.u32 (!%p215_p10), %s680_s18, 5 }
  0x11   : > { %545 = vmatprep.subr.bf16.mxu0 (!%p215_p10), %v690_v1  ;;  %s246_s24 = scalar_lea.vmem (!%p215_p10), [#allocation2], %s530_s21  ;;  %s795_s5 = scalar_lea.hbm (!%p215_p10), %s849_s3, %s537_s22 }
  0x12   : > { %s392_s26 = sshll.u32 (!%p215_p10), %s246_s24, 4  ;;  %s797_s26 = int_to_ptr.vmem [resolvable:$true] %s392_s26 }
  0x13   : > { %s610_s6 = scalar_lea.vmem (!%p215_p10), %s797_s26, 32 }
  0x14   : > { %546 = vmatpush3.bf16.msra.mxu0 (!%p215_p10), %v609_v2  ;;  %p611_p12 = scmp.ne.s32.totalorder (!%p215_p10), %s797_s26, %s610_s6 }
  0x16   : > { %s781_s7 = scalar_select %p255_p11, %s680_s18, 1 }
  0x17   : > { %s371_s18 = scalar_lea.sflag [#allocation3], %s244_s12  ;;  %p612_p13 = pnand %p611_p12, %p758_p4 }
  0x18   : > { %s531_s8 = sshll.u32 %s781_s7, 1 }
  0x19   : > { %s261_s11 = scalar_lea.vmem %s846_s0, %s531_s8  ;;  %p613_p0 = pneg %p612_p13 }
  0x1a   : > { %v276_v3 = vld [vmem:[%s261_s11] sm:$0x3]  ;;  %s692_s8 = smov [#allocation2]  }
  0x1b   : > { %548 = vmatmul.mubr.msk.bf16.vlgmr.msra.gmra.mrb[0].mxu0 %vm300_vm1, %v276_v3  ;;  %s614_s9 = sshll.u32 %s692_s8, 4  ;;  %s615_s9 = int_to_ptr.vmem [resolvable:$false] %s614_s9 }
  0x1c   : > { %s616_s10 = scalar_lea.vmem %s615_s9, 64  ;;  %p617_p1 = scmp.lt.s32.totalorder %s797_s26, %s615_s9 }
  0x1d   : > { %p618_p2 = scmp.lt.s32.totalorder %s616_s10, %s610_s6 }
  0x1f   : > { %p619_p3 = por %p618_p2, %p617_p1 }
  0x21   : > { %p620_p5 = pnand %p619_p3, %p613_p0 }
  0xee   : > { %v338_v5 = vpop.f32.mrb[0].mxu0 }
  0xef   : > { %v339_v6 = vadd.f32 %v532_v4, %v338_v5  ;;  %v549_v7 = vpop.f32.mrb[1].mxu0 }
  0xf0   : > { %v341_v8 = vpop.f32.mrb[2].mxu0 }
  0xf1   : > { %v344_v9 = vmax.f32 %v339_v6, 0.0  ;;  %v550_v10 = vpop.f32.mrb[3].mxu0 }
  0xf3   : > { %v345_v11 = vpack.c.bf16 %v344_v9, %v344_v9  ;;  %v349_v12 = vsel %vm348_vm2, %v344_v9, 0.0 }
  0xf4   : > { %v350_v13 = vrot.slane %v349_v12, 4 }
  0xf5   : > { %347 = vst.msk [vmem:[%s246_s24] sm:$0x3] %vm346_vm3, %v345_v11 }
  0xf6   : > { %v351_v14 = vadd.f32 %v350_v13, %v349_v12 }
  0xf7   : > { %623 = shalt.err (!%p620_p5)
}
  0xf8   : > { %s624_s11 = scalar_lea.hbm %s795_s5, 32  ;;  %s628_s14 = scalar_lea.hbm %s849_s3, 64 }
  0xf9   : > { %p625_p6 = scmp.ne.s32.totalorder %s795_s5, %s624_s11  ;;  %p629_p10 = scmp.lt.u32.totalorder %s795_s5, %s849_s3 }
  0xfa   : > { %p630_p11 = scmp.lt.u32.totalorder %s628_s14, %s624_s11  ;;  %p632_p13 = scmp.lt.u32.totalorder %s624_s11, %s795_s5 }
  0xfb   : > { %p626_p7 = pnand %p625_p6, %p758_p4 }
  0xfc   : > { %p631_p12 = por %p630_p11, %p629_p10 }
  0xfd   : > { %p627_p9 = pneg %p626_p7 }
  0xfe   : > { %p633_p0 = por %p632_p13, %p631_p12 }
 0x100   : > { %p634_p1 = pnand %p633_p0, %p627_p9 }
 0x102   : > { %637 = shalt.err (!%p634_p1)
}
 0x103   : > { %551 = dma.vmem_to_hbm [thread:$0]  (%p758_p4), %s797_s26, 32, %s795_s5, %s371_s18   ;;  %v352_v15 = vrot.slane %v351_v14, 2  ;;  %vm360_vm4 = vcmask 516096  }
 0x104   : > { %s274_s30 = scalar_lea.vmem %s850_s4, %s781_s7 }
 0x105   : > { %v353_v16 = vadd.f32 %v352_v15, %v351_v14 }
 0x107   : > { %v354_v17 = vrot.slane %v353_v16, 1 }
 0x109   : > { %v355_v18 = vadd.f32 %v354_v17, %v353_v16 }
 0x10b   : > { %361 = vst.msk [vmem:[%s274_s30] sm:$0x1] %vm360_vm4, %v355_v18 }
 0x10c PF: > { %p557_p2 = scmp.ge.s32.totalorder %s688_s20, 2  ;;  %s407_s25 = sand.u32 1, %s668_s15  }
 0x10d   : > { %s408_s6 = scalar_lea.sflag [#allocation3], %s407_s25 }
 0x10e   : > { %p554_p3 = pnand %p557_p2, %p765_p8 }
 0x110   : > { %663 = dma.done.wait (!%p554_p3), %s408_s6, 32  }
 0x111   : > { %665 = vsyncadd (!%p554_p3), %s408_s6, 4294967264  ;;  %s18_s20 = sadd.s32 1, %s688_s20   ;;  %s853_s15 = smov %s672_s16 }
 0x112   : > { %p15_p4 = scmp.ge.s32.totalorder %s18_s20, 4   ;;  %s854_s16 = smov %s676_s17 }
 0x113   : > { %s855_s17 = smov %s771_s28  ;;  %s856_s18 = smov %s684_s19 }
 0x114   : > { %s857_s19 = smov %s859_s23  ;;  %17 = sbr.rel (!%p15_p4) target bundleno = 4 (0x4), region = 93 }
 0x11b   :  { %422 = vsyncpa [#allocation3], 1 }
 0x11c   :  { %424 = vsyncpa [#allocation3 + $0x1], 1 }

// kernel: backbone_forward.9
= control target key start
LH: loop header
LB: loop body
LE: loop exit
PB: predicated region body
PF: predicated region fallthrough
CT: control target
= control target key end

     0   :  { %11 = vsyncpa [#allocation3], 0  ;;  %v275_v3 = vmov 0.0|0.0   ;;  %vm276_vm0 = vmmov 0   ;;  %v277_v6 = vmov 0.0   ;;  %vm22_vm1 = vcmask 517120   ;;  %s370_s0 = inlined_call_operand.vmem [shape: f32[2,64], index: 0, kind: input, shape index: {}]   ;;  %s371_s1 = inlined_call_operand.vmem [shape: f32[1,64], index: 1, kind: input, shape index: {}]   ;;  %s372_s2 = inlined_call_operand.vmem [shape: f32[1,64], index: 2, kind: input, shape index: {}]   ;;  %s373_s3 = inlined_call_operand.vmem [shape: f32[64,128], index: 3, kind: input, shape index: {}]   ;;  %s374_s4 = inlined_call_operand.hbm [shape: f32[2,64], index: 4, kind: output, shape index: {0}]   ;;  %s375_s5 = inlined_call_operand.hbm [shape: f32[2,128], index: 5, kind: output, shape index: {1}]  }
   0x1   :  { %v66_v0 = vld [vmem:[%s373_s3] sm:$0xff]  ;;  %v67_v1 = vld [vmem:[%s373_s3 + $0x8] sm:$0xff]  ;;  %v68_v2 = vld [vmem:[%s373_s3 + $0x10] sm:$0xff]  ;;  %208 = vmatprep.subr.bf16.mxu0 %v275_v3  ;;  %205 = vmatprep.mubr.msk.f32.mxu0 %vm276_vm0, %v277_v6 }
   0x2   :  { %v209_v4 = vpack.c.bf16 %v67_v1, %v66_v0  ;;  %v69_v5 = vld [vmem:[%s373_s3 + $0x18] sm:$0xff]  ;;  %v21_v7 = vld [vmem:[%s370_s0] sm:$0x3]  ;;  %v71_v11 = vld [vmem:[%s373_s3 + $0x28] sm:$0xff] }
   0x3   :  { %v212_v8 = vpack.c.bf16 %v69_v5, %v68_v2  ;;  %v23_v9 = vsel %vm22_vm1, %v21_v7, 0.0  ;;  %v70_v10 = vld [vmem:[%s373_s3 + $0x20] sm:$0xff] }
   0x4   :  { %210 = vmatpush3.bf16.msra.mxu0 %v209_v4  ;;  %v24_v12 = vrot.slane %v23_v9, 4 }
   0x5   :  { %211 = vmatprep.subr.bf16.mxu0 %v275_v3 }
   0x6   :  { %12 = vsyncpa [#allocation5], 0  ;;  %v25_v13 = vadd.f32 %v24_v12, %v23_v9  ;;  %v215_v14 = vpack.c.bf16 %v71_v11, %v70_v10  ;;  %v72_v15 = vld [vmem:[%s373_s3 + $0x30] sm:$0xff]  ;;  %v73_v16 = vld [vmem:[%s373_s3 + $0x38] sm:$0xff]  ;;  %vm74_vm2 = vcmask 523264   ;;  %s278_s13 = smov [#allocation2]  }
   0x7   :  { %v218_v19 = vpack.c.bf16 %v73_v16, %v72_v15  ;;  %v177_v35 = vld [vmem:[%s371_s1] ss:$0 sm:$0xff]  ;;  %s155_s14 = sshll.u32 %s278_s13, 4  ;;  %s156_s14 = int_to_ptr.vmem [resolvable:$true] %s155_s14 }
   0x8   :  { %213 = vmatpush3.bf16.msra.mxu0 %v212_v8  ;;  %v26_v17 = vrot.slane %v25_v13, 2  ;;  %v178_v37 = vld [vmem:[%s372_s2] ss:$0 sm:$0xff]  ;;  %s227_s15 = scalar_lea.vmem %s156_s14, 32  ;;  %p232_p1 = scmp.lt.s32.totalorder %s156_s14, %s156_s14 }
   0x9   :  { %214 = vmatprep.subr.bf16.mxu0 %v275_v3  ;;  %p228_p0 = scmp.ne.s32.totalorder %s156_s14, %s227_s15  ;;  %p233_p2 = scmp.lt.s32.totalorder %s227_s15, %s227_s15 }
   0xa   :  { %v27_v18 = vadd.f32 %v26_v17, %v25_v13 }
   0xb   :  { %p234_p3 = por %p233_p2, %p232_p1 }
   0xc   :  { %216 = vmatpush3.bf16.msra.mxu0 %v215_v14  ;;  %v28_v20 = vrot.slane %v27_v18, 1 }
   0xd   :  { %217 = vmatprep.subr.bf16.mxu0 %v275_v3  ;;  %p235_p4 = pnand %p234_p3, %p228_p0 }
   0xe   :  { %v29_v21 = vadd.f32 %v28_v20, %v27_v18 }
  0x10   :  { %219 = vmatpush3.bf16.msra.mxu0 %v218_v19  ;;  %v31_v22 = vmul.f32 0.5, %v29_v21 }
  0x12   :  { %v32_v23 = vsub.f32 %v21_v7, %v31_v22 }
  0x14   :  { %v33_v24 = vmul.f32 %v32_v23, %v32_v23 }
  0x16   :  { %v34_v25 = vsel %vm22_vm1, %v33_v24, 0.0 }
  0x17   :  { %v35_v26 = vrot.slane %v34_v25, 4 }
  0x19   :  { %v36_v27 = vadd.f32 %v35_v26, %v34_v25 }
  0x1b   :  { %v37_v28 = vrot.slane %v36_v27, 2 }
  0x1d   :  { %v38_v29 = vadd.f32 %v37_v28, %v36_v27 }
  0x1f   :  { %v39_v30 = vrot.slane %v38_v29, 1 }
  0x21   :  { %v40_v31 = vadd.f32 %v39_v30, %v38_v29 }
  0x23   :  { %v41_v32 = vmul.f32 0.5, %v40_v31 }
  0x25   :  { %v42_v33 = vadd.f32 1e-05, %v41_v32 }
  0x27   :  { %225 = vrsqrt.f32 %v42_v33 }
  0x31   :  { %v226_v34 = vpop.eup %225 }
  0x32   :  { %v44_v36 = vmul.f32 %v226_v34, %v32_v23 }
  0x34   :  { %v52_v38 = vmul.f32 %v177_v35, %v44_v36 }
  0x36   :  { %v60_v39 = vadd.f32 %v178_v37, %v52_v38 }
  0x38   :  { %206 = vmatmul.mubr.msk.f32.vlgmr.msra.gmra.mrb[0].mxu0 %vm74_vm2, %v60_v39  ;;  %65 = vst.msk [vmem:[#allocation2] sm:$0x3] %vm22_vm1, %v60_v39 }
  0x39   :  { %238 = shalt.err (!%p235_p4)
}
  0x3a   :  { %s239_s2 = scalar_lea.hbm %s374_s4, 32 }
  0x3b   :  { %p240_p5 = scmp.ne.s32.totalorder %s374_s4, %s239_s2  ;;  %p243_p6 = scmp.lt.u32.totalorder %s239_s2, %s374_s4 }
  0x3d   :  { %p245_p7 = pnand %p243_p6, %p240_p5 }
  0x3f   :  { %248 = shalt.err (!%p245_p7)
}
  0x40   :  { %158 = dma.vmem_to_hbm [thread:$0]  %s156_s14, 32, %s374_s4, [#allocation3]  }
  0x41   :  { %s279_s23 = smov [#allocation4]  }
  0x42   :  { %s165_s24 = sshll.u32 %s279_s23, 4  ;;  %s166_s24 = int_to_ptr.vmem [resolvable:$true] %s165_s24 }
  0x43   :  { %s249_s25 = scalar_lea.vmem %s166_s24, 32  ;;  %p254_p9 = scmp.lt.s32.totalorder %s166_s24, %s166_s24 }
  0x44   :  { %p250_p8 = scmp.ne.s32.totalorder %s166_s24, %s249_s25  ;;  %p255_p10 = scmp.lt.s32.totalorder %s249_s25, %s249_s25 }
  0x46   :  { %p256_p11 = por %p255_p10, %p254_p9 }
  0x48   :  { %p257_p12 = pnand %p256_p11, %p250_p8 }
 0x10b   :  { %v144_v40 = vpop.f32.mrb[0].mxu0 }
 0x10c   :  { %148 = vst [vmem:[#allocation4] sm:$0x3] %v144_v40  ;;  %v207_v41 = vpop.f32.mrb[1].mxu0 }
 0x10d   :  { %260 = shalt.err (!%p257_p12)
}
 0x10e   :  { %s261_s28 = scalar_lea.hbm %s375_s5, 32 }
 0x10f   :  { %p262_p13 = scmp.ne.s32.totalorder %s375_s5, %s261_s28  ;;  %p265_p0 = scmp.lt.u32.totalorder %s261_s28, %s375_s5 }
 0x111   :  { %p267_p1 = pnand %p265_p0, %p262_p13 }
 0x113   :  { %270 = shalt.err (!%p267_p1)
}
 0x114   :  { %168 = dma.vmem_to_hbm [thread:$0]  %s166_s24, 32, %s375_s5, [#allocation5]  }
 0x115   :  { %271 = dma.done.wait [#allocation3], 32  }
 0x116   :  { %272 = vsyncadd [#allocation3], 4294967264 }
 0x117   :  { %273 = dma.done.wait [#allocation5], 32  }
 0x118   :  { %274 = vsyncadd [#allocation5], 4294967264 }
 0x119   :  { %175 = vsyncpa [#allocation3], 1 }
 0x11a   :  { %176 = vsyncpa [#allocation5], 1 }

</bundles_post_ra>
